<compile_context>
chip_gen: v7x
topology: tpu7x:2x2x1
jax: 0.10.0
libtpu: 0.0.40
codegen_flags: <defaults>
</compile_context>

<pallas_src>
import math
import jax
import jax.numpy as jnp
from jax.experimental import pallas as pl
from jax.experimental.pallas import tpu as pltpu


def _attention_kernel(x_ref, w1_ref, b1_ref, w2_ref, o_ref):
    # x_ref : (Bb, T, D)  block of Bb batch rows
    # w1_ref: (D, H), b1_ref: (1, H), w2_ref: (1, H)   (constant across grid)
    # o_ref : (Bb, D)
    Bb, T, D = x_ref.shape
    H = w1_ref.shape[1]

    x = x_ref[...]                                        # (Bb, T, D)

    # linear1 + tanh: collapse (Bb, T) into the matmul M dimension so the MXU
    # sees one (Bb*T, D) @ (D, H) instead of Bb tiny (T, D) matmuls.
    x2d = x.reshape(Bb * T, D)
    m = jnp.tanh(
        jnp.dot(x2d, w1_ref[...], preferred_element_type=jnp.float32)
        + b1_ref[...]                                     # broadcast (1, H)
    )                                                     # (Bb*T, H)
    m = m.reshape(Bb, T, H)

    # linear2: an (H, 1) matmul wastes the MXU columns; do a VPU multiply +
    # lane reduce instead.  b2 is omitted: a uniform shift of the logits
    # cancels exactly in the softmax below.
    s = jnp.sum(m * w2_ref[...], axis=-1, keepdims=True)  # (Bb, T, 1)

    # softmax over the sequence dimension (dim=1 of the (B, T, 1) tensor)
    s_max = jnp.max(s, axis=1, keepdims=True)             # (Bb, 1, 1)
    e = jnp.exp(s - s_max)                                # (Bb, T, 1)
    denom = jnp.sum(e, axis=1, keepdims=True)             # (Bb, 1, 1)
    score = e * pl.reciprocal(denom, approx=True)         # (Bb, T, 1)

    # weighted sum over the sequence: (score * X).sum(dim=1) -> (Bb, D)
    o_ref[...] = jnp.sum(score * x, axis=1).astype(o_ref.dtype)


def _choose_block_b(B, T, D, target_x_block_bytes):
    """Largest divisor of B whose X block fits the byte target, preferring a
    proper divisor so the grid keeps >= 2 steps (v7x megacore sharding)."""
    best = 1
    for cand in range(1, B + 1):
        if B % cand != 0:
            continue
        if cand * T * D * 4 > target_x_block_bytes:
            continue
        if cand < B or B == 1:
            best = cand
    return best


def attention_forward(x, w1, b1, w2, b2=None, *, block_b=None,
                      target_x_block_bytes=8 << 20):
    """x: (B, T, D) f32. w1: (D, H), b1: (1, H), w2: (H, 1), b2: (1, 1).
    Returns (B, D) f32.

    b2 is accepted for API parity but unused: softmax over the sequence dim is
    invariant to a uniform logit shift, so linear2's bias is a no-op here.
    """
    B, T, D = x.shape
    H = w1.shape[1]
    assert w1.shape == (D, H)
    assert b1.shape == (1, H)
    assert w2.shape == (H, 1)

    if block_b is None:
        block_b = _choose_block_b(B, T, D, target_x_block_bytes)
    assert B % block_b == 0, (B, block_b)
    grid_b = B // block_b

    w2_row = w2.reshape(1, H)

    # VMEM budget: double-buffered X and output blocks + weights, with headroom.
    need = 2 * (block_b * T * D * 4 + block_b * D * 4) + (D * H + 2 * H) * 4
    vmem_limit = max(32 << 20, min(2 * need + (8 << 20), 100 << 20))

    return pl.pallas_call(
        _attention_kernel,
        out_shape=jax.ShapeDtypeStruct((B, D), jnp.float32),
        grid_spec=pltpu.PrefetchScalarGridSpec(
            num_scalar_prefetch=0,
            grid=(grid_b,),
            in_specs=[
                # X: block_b batch rows per grid step (lives in VMEM by default)
                pl.BlockSpec((block_b, T, D), lambda b: (b, 0, 0)),
                # Weights: constant index_map -> DMA'd once, reused across grid
                pl.BlockSpec((D, H), lambda b: (0, 0)),
                pl.BlockSpec((1, H), lambda b: (0, 0)),
                pl.BlockSpec((1, H), lambda b: (0, 0)),
            ],
            out_specs=pl.BlockSpec((block_b, D), lambda b: (b, 0)),
        ),
        compiler_params=pltpu.CompilerParams(
            dimension_semantics=("parallel",),
            vmem_limit_bytes=vmem_limit,
        ),
    )(x, w1, b1, w2_row)


def _xavier_normal(key, shape_out_in):
    # torch.nn.init.xavier_normal_ on a (fan_out, fan_in) weight
    fan_out, fan_in = shape_out_in
    std = math.sqrt(2.0 / (fan_in + fan_out))
    return std * jax.random.normal(key, shape_out_in, dtype=jnp.float32)


def _reference_forward(x, w1, b1, w2, b2):
    # plain-JAX reference (includes b2 to confirm it is a softmax no-op)
    m = jnp.tanh(jnp.einsum("btd,dh->bth", x, w1) + b1[0])
    s = jnp.einsum("bth,ho->bto", m, w2) + b2[0]
    score = jax.nn.softmax(s, axis=1)
    return jnp.sum(score * x, axis=1)


if __name__ == "__main__":
    B, T = 16, 8
    input_size, hidden_size = 32, 32   # D, H

    key = jax.random.PRNGKey(0)
    kx, kw1, kw2, kb1, kb2 = jax.random.split(key, 5)

    x = jax.random.normal(kx, (B, T, input_size), dtype=jnp.float32)

    # Deterministic parameter init matching the module's shapes.
    w1_torch = _xavier_normal(kw1, (hidden_size, input_size))   # (H, D)
    w2_torch = _xavier_normal(kw2, (1, hidden_size))            # (1, H)
    bound1 = 1.0 / math.sqrt(input_size)
    bound2 = 1.0 / math.sqrt(hidden_size)
    b1 = jax.random.uniform(kb1, (1, hidden_size), minval=-bound1, maxval=bound1,
                            dtype=jnp.float32)
    b2 = jax.random.uniform(kb2, (1, 1), minval=-bound2, maxval=bound2,
                            dtype=jnp.float32)

    # kernel uses math-convention (in, out) weights
    w1 = w1_torch.T                                             # (D, H)
    w2 = w2_torch.T                                             # (H, 1)

    out = attention_forward(x, w1, b1, w2, b2)
    out = jax.block_until_ready(out)

    ref = _reference_forward(x, w1, b1, w2, b2)
    assert out.shape == (B, input_size)
    # approx reciprocal (EUP) -> slightly looser tolerance than exact divide
    assert jnp.allclose(out, ref, atol=2e-3, rtol=2e-3), \
        float(jnp.max(jnp.abs(out - ref)))

    print("KERNEL_OK")
</pallas_src>

<mosaic_0001>
module attributes {stable_mosaic.version = 11 : i64} {
  func.func @_attention_kernel(%arg0: i32, %arg1: memref<8x8x32xf32, #tpu.memory_space<vmem>>, %arg2: memref<32x32xf32, #tpu.memory_space<vmem>>, %arg3: memref<1x32xf32, #tpu.memory_space<vmem>>, %arg4: memref<1x32xf32, #tpu.memory_space<vmem>>, %arg5: memref<8x32xf32, #tpu.memory_space<vmem>>) attributes {dimension_semantics = [#tpu.dimension_semantics<parallel>], iteration_bounds = array<i64: 2>, scalar_prefetch = 0 : i64, scratch_operands = 0 : i64, tpu.core_type = #tpu.core_type<tc>, window_params = [{transform_indices = @transform_0, window_bounds = array<i64: 8, 8, 32>}, {pipeline_mode = #tpu.pipeline_mode<synchronous>, transform_indices = @transform_1, window_bounds = array<i64: 32, 32>}, {pipeline_mode = #tpu.pipeline_mode<synchronous>, transform_indices = @transform_2, window_bounds = array<i64: 1, 32>}, {pipeline_mode = #tpu.pipeline_mode<synchronous>, transform_indices = @transform_3, window_bounds = array<i64: 1, 32>}, {transform_indices = @transform_4, window_bounds = array<i64: 8, 32>}]} {
    %c0 = arith.constant 0 : index
    %c0_0 = arith.constant 0 : index
    %c0_1 = arith.constant 0 : index
    %0 = vector.load %arg1[%c0, %c0_0, %c0_1] : memref<8x8x32xf32, #tpu.memory_space<vmem>>, vector<8x8x32xf32>
    %1 = vector.shape_cast %0 : vector<8x8x32xf32> to vector<64x32xf32>
    %c0_2 = arith.constant 0 : index
    %c0_3 = arith.constant 0 : index
    %2 = vector.load %arg2[%c0_2, %c0_3] : memref<32x32xf32, #tpu.memory_space<vmem>>, vector<32x32xf32>
    %cst = arith.constant dense<0.000000e+00> : vector<64x32xf32>
    %3 = tpu.matmul %1, %2, %cst {dimension_numbers = #tpu.dot_dimension_numbers<[1], [0], [0], [1], [0, 0, 1, 1], [], []>} : vector<64x32xf32>, vector<32x32xf32>, vector<64x32xf32> -> vector<64x32xf32>
    %c0_4 = arith.constant 0 : index
    %c0_5 = arith.constant 0 : index
    %4 = vector.load %arg3[%c0_4, %c0_5] : memref<1x32xf32, #tpu.memory_space<vmem>>, vector<1x32xf32>
    %5 = vector.broadcast %4 : vector<1x32xf32> to vector<64x32xf32>
    %6 = arith.addf %3, %5 : vector<64x32xf32>
    %7 = math.tanh %6 : vector<64x32xf32>
    %8 = vector.shape_cast %7 : vector<64x32xf32> to vector<8x8x32xf32>
    %c0_6 = arith.constant 0 : index
    %c0_7 = arith.constant 0 : index
    %9 = vector.load %arg4[%c0_6, %c0_7] : memref<1x32xf32, #tpu.memory_space<vmem>>, vector<1x32xf32>
    %10 = vector.shape_cast %9 : vector<1x32xf32> to vector<1x1x32xf32>
    %11 = vector.broadcast %10 : vector<1x1x32xf32> to vector<8x8x32xf32>
    %12 = arith.mulf %8, %11 : vector<8x8x32xf32>
    %cst_8 = arith.constant dense<0.000000e+00> : vector<8x8xf32>
    %13 = vector.multi_reduction <add>, %12, %cst_8 [2] : vector<8x8x32xf32> to vector<8x8xf32>
    %14 = vector.shape_cast %13 : vector<8x8xf32> to vector<8x8x1xf32>
    %cst_9 = arith.constant dense<0xFF800000> : vector<8x1xf32>
    %15 = vector.multi_reduction <maximumf>, %14, %cst_9 [1] : vector<8x8x1xf32> to vector<8x1xf32>
    %16 = vector.shape_cast %15 : vector<8x1xf32> to vector<8x1x1xf32>
    %17 = vector.broadcast %16 : vector<8x1x1xf32> to vector<8x8x1xf32>
    %18 = arith.subf %14, %17 : vector<8x8x1xf32>
    %19 = math.exp %18 : vector<8x8x1xf32>
    %cst_10 = arith.constant dense<0.000000e+00> : vector<8x1xf32>
    %20 = vector.multi_reduction <add>, %19, %cst_10 [1] : vector<8x8x1xf32> to vector<8x1xf32>
    %21 = vector.shape_cast %20 : vector<8x1xf32> to vector<8x1x1xf32>
    %22 = tpu.reciprocal %21 {approx = true} : vector<8x1x1xf32> -> vector<8x1x1xf32>
    %23 = vector.broadcast %22 : vector<8x1x1xf32> to vector<8x8x1xf32>
    %24 = arith.mulf %19, %23 : vector<8x8x1xf32>
    %25 = vector.broadcast %24 : vector<8x8x1xf32> to vector<8x8x32xf32>
    %26 = arith.mulf %25, %0 : vector<8x8x32xf32>
    %cst_11 = arith.constant dense<0.000000e+00> : vector<8x32xf32>
    %27 = vector.multi_reduction <add>, %26, %cst_11 [1] : vector<8x8x32xf32> to vector<8x32xf32>
    %c0_12 = arith.constant 0 : index
    %c0_13 = arith.constant 0 : index
    %28 = vector.load %arg5[%c0_12, %c0_13] : memref<8x32xf32, #tpu.memory_space<vmem>>, vector<8x32xf32>
    tpu.vector_store %arg5[%c0_12, %c0_13], %27 {strides = array<i32>} : memref<8x32xf32, #tpu.memory_space<vmem>>, vector<8x32xf32>,
    return
  }
  func.func @transform_0(%arg0: i32) -> (i32, i32, i32) {
    %c0_i32 = arith.constant 0 : i32
    %c0_i32_0 = arith.constant 0 : i32
    %c0_i32_1 = arith.constant 0 : i32
    return %arg0, %c0_i32, %c0_i32_0 : i32, i32, i32
  }
  func.func @transform_1(%arg0: i32) -> (i32, i32) {
    %c0_i32 = arith.constant 0 : i32
    %c0_i32_0 = arith.constant 0 : i32
    %c0_i32_1 = arith.constant 0 : i32
    return %c0_i32, %c0_i32_0 : i32, i32
  }
  func.func @transform_2(%arg0: i32) -> (i32, i32) {
    %c0_i32 = arith.constant 0 : i32
    %c0_i32_0 = arith.constant 0 : i32
    %c0_i32_1 = arith.constant 0 : i32
    return %c0_i32, %c0_i32_0 : i32, i32
  }
  func.func @transform_3(%arg0: i32) -> (i32, i32) {
    %c0_i32 = arith.constant 0 : i32
    %c0_i32_0 = arith.constant 0 : i32
    %c0_i32_1 = arith.constant 0 : i32
    return %c0_i32, %c0_i32_0 : i32, i32
  }
  func.func @transform_4(%arg0: i32) -> (i32, i32) {
    %c0_i32 = arith.constant 0 : i32
    %c0_i32_0 = arith.constant 0 : i32
    return %arg0, %c0_i32 : i32, i32
  }
}

</mosaic_0001>

<bundles_post_ra>
// kernel: tpu_custom_call.1
= control target key start
LH: loop header
LB: loop body
LE: loop exit
PB: predicated region body
PF: predicated region fallthrough
CT: control target
= control target key end

     0   :  { %9 = vsyncpa [#allocation3], 0  ;;  %s1403_s0 = inlined_call_operand.hbm [shape: f32[16,8,32], index: 0, kind: input, shape index: {}]   ;;  %s1404_s1 = inlined_call_operand.hbm [shape: f32[32,32], index: 1, kind: input, shape index: {}]   ;;  %s1405_s2 = inlined_call_operand.vmem [shape: f32[1,32], index: 2, kind: input, shape index: {}]   ;;  %s1406_s3 = inlined_call_operand.vmem [shape: f32[1,32], index: 3, kind: input, shape index: {}]   ;;  %s1407_s4 = inlined_call_operand.hbm [shape: f32[16,32], index: 4, kind: output, shape index: {}]  }
   0x1   :  { %11 = vsyncpa [#allocation3 + $0x1], 0 }
   0x2   :  { %12 = vsyncpa [#allocation6], 0 }
   0x3   :  { %13 = vsyncpa [#allocation4], 0 }
   0x4   :  { %15 = vsyncpa [#allocation4 + $0x1], 0  ;;  %s1083_s15 = smov 0   ;;  %s1085_s16 = smov 0  }
   0x5   :  { %s1087_s17 = smov 0   ;;  %s1089_s18 = smov 0  }
   0x6 LB: > { %s1104_s19 = sadd.s32 4294967295, %s1051_s18   ;;  %s746_s20 = sadd.s32 4294967294, %s1051_s18   ;;  %s1051_s18 = sphi %s1089_s18, %s1427_s18   ;;  %s1047_s17 = sphi %s1087_s17, %s1426_s17   ;;  %s1043_s16 = sphi %s1085_s16, %s1425_s16   ;;  %s1039_s15 = sphi %s1083_s15, %s1424_s15  }
   0x7   : > { %p41_p0 = scmp.ne.s32.totalorder %s1043_s16, %s1039_s15  ;;  %p1408_p1 = scmp.eq.s32.totalorder %s1104_s19, 0 }
   0x8   : > { %p134_p3 = scmp.eq.s32.totalorder %s746_s20, 1  ;;  %p747_p5 = scmp.ge.s32.totalorder %s1051_s18, 1 }
   0x9   : > { %p1113_p4 = por %p1408_p1, %p41_p0  ;;  %p141_p7 = scmp.lt.s32.totalorder %s1051_s18, 3 }
   0xa   : > { %p1118_p6 = por %p134_p3, %p41_p0  ;;  %s1053_s24 = smov [#allocation5]  }
   0xb   : > { %s1411_s21 = scalar_select %p1113_p4, 1, 0 }
   0xc   : > { %s1412_s22 = scalar_select %p1118_p6, 1, 0 }
   0xd   : > { %p1123_p8 = pnand %p747_p5, %p141_p7  ;;  %s153_s25 = sshll.u32 %s1053_s24, 4  ;;  %s1127_s25 = int_to_ptr.vmem [resolvable:$true] %s153_s25 }
   0xe   : > { %s1139_s27 = sadd.s32 1, %s1051_s18   ;;  %s28_s28 = sadd.s32 1, %s1047_s17 }
   0xf   : > { %s1413_s23 = scalar_select %p1123_p8, 1, 0 }
  0x10   : > { %p824_p9 = pneg %p1123_p8  ;;  %s25_s29 = ssub.s32 %s1051_s18, %s1139_s27 }
  0x11   : > { %s923_s6 = scalar_lea.hbm %s1404_s1, 512 }
  0x12   : > { %p1134_p11 = pnand %p824_p9, %p1408_p1  ;;  %p924_p12 = scmp.ne.s32.totalorder %s1404_s1, %s923_s6 }
  0x13   : > { %p930_p5 = scmp.lt.u32.totalorder %s923_s6, %s1404_s1 }
  0x14   : > { %p925_p13 = pneg %p1134_p11 }
  0x16   : > { %p926_p0 = pnand %p925_p13, %p924_p12 }
  0x18   : > { %p927_p3 = pneg %p926_p0 }
  0x1a   : > { %p932_p7 = pnand %p930_p5, %p927_p3 }
  0x1c   : > { %935 = shalt.err (!%p932_p7)
}
  0x1d   : > { %s936_s11 = scalar_lea.vmem %s1127_s25, 512  ;;  %p944_p2 = scmp.lt.s32.totalorder %s1127_s25, %s1127_s25 }
  0x1e   : > { %p937_p9 = scmp.ne.s32.totalorder %s1127_s25, %s936_s11  ;;  %p945_p6 = scmp.lt.s32.totalorder %s936_s11, %s936_s11 }
  0x20   : > { %p939_p10 = pnand %p937_p9, %p925_p13  ;;  %p946_p4 = por %p945_p6, %p944_p2 }
  0x22   : > { %p940_p1 = pneg %p939_p10 }
  0x24   : > { %p947_p8 = pnand %p946_p4, %p940_p1 }
  0x26   : > { %950 = shalt.err (!%p947_p8)
}
  0x27   : > { %s1054_s12 = smov 128   ;;  %s1055_s13 = smov 8  }
  0x28   : > { %827 = dma.hbm_to_vmem [thread:$0]  (!%p1134_p11), %s1404_s1, 512, %s1127_s25, [#allocation6], %s1054_s12, %s1054_s12, %s1055_s13  }
  0x29   : > { %p26_p1 = scmp.eq.s32.totalorder %s25_s29, 0  ;;  %p35_p2 = scmp.ne.s32.totalorder %s1047_s17, %s1043_s16 }
  0x2a   : > { %p36_p4 = scmp.eq.s32.totalorder %s1051_s18, 0  ;;  %p837_p6 = scmp.lt.s32.totalorder %s1051_s18, 2 }
  0x2b   : > { %s1173_s24 = scalar_select %p26_p1, %s1047_s17, %s28_s28  }
  0x2c   : > { %p37_p8 = por %p36_p4, %p35_p2  ;;  %p1415_p10 = scmp.eq.s32.totalorder %s1104_s19, 1 }
  0x2d   : > { %s173_s26 = sand.u32 1, %s1047_s17   ;;  %s771_s5 = sshll.u32 %s1051_s18, 10 }
  0x2e   : > { %p1177_p12 = por %p1415_p10, %p35_p2  ;;  %s750_s6 = sshll.u32 %s173_s26, 6 }
  0x2f   : > { %s1186_s9 = scalar_lea.hbm %s1403_s0, %s771_s5  ;;  %s177_s25 = scalar_lea.vmem [#allocation2], %s750_s6 }
  0x30   : > { %s184_s28 = sshll.u32 %s177_s25, 4  ;;  %p1188_p11 = pnand %p837_p6, %p37_p8  ;;  %s1192_s28 = int_to_ptr.vmem [resolvable:$true] %s184_s28 }
  0x31   : > { %s1194_s10 = scalar_lea.sflag [#allocation3], %s173_s26  ;;  %s951_s11 = scalar_lea.hbm %s1186_s9, 1024 }
  0x32   : > { %p952_p13 = scmp.ne.s32.totalorder %s1186_s9, %s951_s11  ;;  %p953_p0 = pneg %p1188_p11 }
  0x33   : > { %s956_s5 = scalar_lea.hbm %s1403_s0, 2048  ;;  %p957_p7 = scmp.lt.u32.totalorder %s1186_s9, %s1403_s0 }
  0x34   : > { %p954_p3 = pnand %p953_p0, %p952_p13  ;;  %p958_p9 = scmp.lt.u32.totalorder %s956_s5, %s951_s11 }
  0x35   : > { %p960_p2 = scmp.lt.u32.totalorder %s951_s11, %s1186_s9 }
  0x36   : > { %p955_p5 = pneg %p954_p3  ;;  %p959_p1 = por %p958_p9, %p957_p7 }
  0x38   : > { %p961_p4 = por %p960_p2, %p959_p1 }
  0x3a   : > { %p962_p6 = pnand %p961_p4, %p955_p5 }
  0x3c   : > { %965 = shalt.err (!%p962_p6)
}
  0x3d   : > { %s966_s26 = scalar_lea.vmem %s1192_s28, 1024  ;;  %s1056_s8 = smov [#allocation2]  }
  0x3e   : > { %p967_p8 = scmp.ne.s32.totalorder %s1192_s28, %s966_s26  ;;  %s971_s25 = sshll.u32 %s1056_s8, 4  ;;  %s972_s25 = int_to_ptr.vmem [resolvable:$false] %s971_s25 }
  0x3f   : > { %s973_s14 = scalar_lea.vmem %s972_s25, 2048  ;;  %p974_p3 = scmp.lt.s32.totalorder %s1192_s28, %s972_s25 }
  0x40   : > { %p969_p10 = pnand %p967_p8, %p953_p0  ;;  %p975_p7 = scmp.lt.s32.totalorder %s973_s14, %s966_s26 }
  0x42   : > { %p970_p13 = pneg %p969_p10  ;;  %p976_p9 = por %p975_p7, %p974_p3 }
  0x44   : > { %p977_p1 = pnand %p976_p9, %p970_p13 }
  0x46   : > { %980 = shalt.err (!%p977_p1)
}
  0x47   : > { %831 = dma.hbm_to_vmem [thread:$0]  (!%p1188_p11), %s1186_s9, 1024, %s1192_s28, %s1194_s10, %s1054_s12, %s1054_s12, %s1055_s13  }
  0x48   : > { %p1418_p0 = scmp.ne.s32.totalorder %s1413_s23, 0 }
  0x49   : > { %s1228_s11 = sand.u32 (!%p1418_p0), 1, %s1043_s16   ;;  %p1419_p5 = scmp.ne.s32.totalorder (!%p1418_p0), %s1411_s21, 0 }
  0x4a   : > { %196 = sbr.rel (%p1418_p0) target bundleno = 566 (0x236), region = 36  ;;  %s754_s20 = sshll.u32 (!%p1418_p0), %s1228_s11, 6 }
  0x4b   : > { %s199_s5 = scalar_lea.sflag (!%p1418_p0), [#allocation3], %s1228_s11  ;;  %s1232_s6 = scalar_lea.vmem (!%p1418_p0), [#allocation2], %s754_s20 }
  0x51   : > { %1026 = dma.done.wait (%p1419_p5), %s199_s5, 1024  }
  0x52   : > { %1028 = vsyncadd (%p1419_p5), %s199_s5, 4294966272  ;;  %p1420_p11 = scmp.eq.s32.totalorder %s1104_s19, 0 }
  0x54   : > { %1030 = dma.done.wait (%p1420_p11), [#allocation6], 512   ;;  %p1421_p2 = pmov %p1420_p11 }
  0x55   : > { %vm251_vm0 = vcmask 261120   ;;  %v240_v0 = vld [vmem:[#allocation5] sm:$0xff]  ;;  %v241_v1 = vld [vmem:[#allocation5 + $0x8] sm:$0xff]  ;;  %v242_v2 = vld [vmem:[#allocation5 + $0x10] sm:$0xff]  ;;  %vm636_vm1 = vcmask 1041409   ;;  %vm638_vm2 = vcmask 1042434  }
  0x56   : > { %1032 = vsyncadd (%p1421_p2), [#allocation6], 4294966784  ;;  %v804_v3 = vpack.c.bf16 %v241_v1, %v240_v0  ;;  %v243_v4 = vld [vmem:[#allocation5 + $0x18] sm:$0xff]  ;;  %v1243_v5 = vld [vmem:[%s1232_s6] sm:$0xff]  ;;  %vm640_vm3 = vcmask 1043459   ;;  %s756_s9 = sshll.u32 %s1228_s11, 3 }
  0x57   : > { %v808_v6 = vpack.c.bf16 %v243_v4, %v242_v2  ;;  %792 = vmatprep.mubr.msk.f32.mxu0 %vm251_vm0, %v1243_v5  ;;  %v1248_v7 = vld [vmem:[%s1232_s6 + $0x20] sm:$0xff]  ;;  %v1253_v8 = vld [vmem:[%s1232_s6 + $0x8] sm:$0xff]  ;;  %v1259_v10 = vld [vmem:[%s1232_s6 + $0x10] sm:$0xff]  ;;  %vm642_vm4 = vcmask 1044484   ;;  %vm644_vm5 = vcmask 1045509   ;;  %vm646_vm6 = vcmask 1046534  }
  0x58   : > { %805 = vmatprep.subr.bf16.mxu0 %v804_v3  ;;  %812 = vmatprep.subr.bf16.mxu1 %v804_v3  ;;  %v1256_v9 = vld [vmem:[%s1232_s6 + $0x28] sm:$0xff]  ;;  %v1262_v11 = vld [vmem:[%s1232_s6 + $0x30] sm:$0xff]  ;;  %v1271_v12 = vld [vmem:[%s1232_s6 + $0x18] sm:$0xff]  ;;  %s768_s28 = sshll.u32 %s1104_s19, 7  ;;  %s230_s29 = scalar_lea.vmem [#allocation7], %s756_s9  ;;  %vm648_vm7 = vcmask 1047559  }
  0x59   : > { %807 = vmatpush3.bf16.msra.mxu0 %v804_v3  ;;  %814 = vmatpush3.bf16.msra.mxu1 %v804_v3  ;;  %v1276_v13 = vld [vmem:[%s1232_s6 + $0x38] sm:$0xff]  ;;  %v757_v14 = vld [vmem:[%s1405_s2] ss:$0 sm:$0xff]  ;;  %s666_s10 = sshll.u32 %s230_s29, 4  ;;  %s1358_s8 = scalar_lea.hbm %s1407_s4, %s768_s28  ;;  %s1360_s10 = int_to_ptr.vmem [resolvable:$true] %s666_s10 }
  0x5a   : > { %809 = vmatprep.subr.bf16.mxu0 %v808_v6  ;;  %813 = vmatprep.subr.bf16.mxu1 %v808_v6  ;;  %v766_v31 = vld [vmem:[%s1406_s3] ss:$0 sm:$0xff]  ;;  %s653_s25 = scalar_lea.sflag [#allocation4], %s1228_s11  ;;  %s981_s19 = scalar_lea.vmem %s1360_s10, 128 }
  0x5b   : > { %798 = vmatprep.mubr.msk.f32.mxu1 %vm251_vm0, %v1248_v7  ;;  %p982_p4 = scmp.ne.s32.totalorder %s1360_s10, %s981_s19  ;;  %s1057_s14 = smov [#allocation7]  }
  0x5c   : > { %s985_s20 = sshll.u32 %s1057_s14, 4  ;;  %s986_s20 = int_to_ptr.vmem [resolvable:$false] %s985_s20 }
  0x5d   : > { %811 = vmatpush3.bf16.msra.mxu0 %v808_v6  ;;  %815 = vmatpush3.bf16.msra.mxu1 %v808_v6  ;;  %p983_p6 = pnand %p982_p4, %p1177_p12  ;;  %s987_s5 = scalar_lea.vmem %s986_s20, 256 }
  0x5e   : > { %p988_p10 = scmp.lt.s32.totalorder %s1360_s10, %s986_s20  ;;  %p989_p13 = scmp.lt.s32.totalorder %s987_s5, %s981_s19 }
  0x5f   : > { %p984_p8 = pneg %p983_p6 }
  0x60   : > { %793 = vmatmul.mubr.msk.f32.vlgmr.msra.gmra.mrb[0].mxu0 %vm251_vm0, %v1253_v8  ;;  %799 = vmatmul.mubr.msk.f32.vlgmr.msra.gmra.mrb[0].mxu1 %vm251_vm0, %v1256_v9  ;;  %p990_p3 = por %p989_p13, %p988_p10 }
  0x61   : > { %795 = vmatprep.mubr.msk.f32.mxu0 %vm251_vm0, %v1259_v10  ;;  %801 = vmatprep.mubr.msk.f32.mxu1 %vm251_vm0, %v1262_v11 }
  0x62   : > { %p991_p7 = pnand %p990_p3, %p984_p8 }
  0x64   : > { %796 = vmatmul.mubr.msk.f32.gmra.mrb[2].mxu0 %vm251_vm0, %v1271_v12  ;;  %802 = vmatmul.mubr.msk.f32.gmra.mrb[2].mxu1 %vm251_vm0, %v1276_v13 }
 0x133   : > { %v794_v15 = vpop.f32.mrb[0].mxu0  ;;  %v800_v16 = vpop.f32.mrb[0].mxu1 }
 0x134   : > { %v348_v17 = vadd.f32 %v794_v15, %v757_v14  ;;  %v342_v18 = vpop.f32.mrb[1].mxu0  ;;  %v362_v19 = vpop.f32.mrb[1].mxu1  ;;  %v368_v29 = vadd.f32 %v800_v16, %v757_v14 }
 0x135   : > { %v343_v20 = vadd.f32 %v757_v14, %v342_v18  ;;  %v363_v21 = vadd.f32 %v757_v14, %v362_v19 }
 0x136   : > { %875 = vtanh.f32 %v348_v17 }
 0x137   : > { %877 = vtanh.f32 %v343_v20  ;;  %v797_v22 = vpop.f32.mrb[2].mxu0  ;;  %v803_v23 = vpop.f32.mrb[2].mxu1 }
 0x138   : > { %v358_v24 = vadd.f32 %v797_v22, %v757_v14  ;;  %v352_v25 = vpop.f32.mrb[3].mxu0  ;;  %v372_v26 = vpop.f32.mrb[3].mxu1  ;;  %879 = vtanh.f32 %v363_v21  ;;  %v378_v30 = vadd.f32 %v803_v23, %v757_v14 }
 0x139   : > { %v353_v27 = vadd.f32 %v757_v14, %v352_v25  ;;  %v373_v28 = vadd.f32 %v757_v14, %v372_v26 }
 0x13a   : > { %881 = vtanh.f32 %v358_v24 }
 0x13b   : > { %883 = vtanh.f32 %v353_v27 }
 0x13c   : > { %885 = vtanh.f32 %v373_v28 }
 0x13d   : > { %887 = vtanh.f32 %v368_v29 }
 0x13e   : > { %889 = vtanh.f32 %v378_v30 }
 0x140   : > { %v876_v32 = vpop.eup %875 }
 0x141   : > { %v878_v33 = vpop.eup %877  ;;  %v397_v34 = vmul.f32 %v876_v32, %v766_v31 }
 0x142   : > { %v880_v35 = vpop.eup %879  ;;  %v396_v37 = vmul.f32 %v878_v33, %v766_v31 }
 0x143   : > { %v407_v36 = vsel %vm251_vm0, %v397_v34, 0.0  ;;  %v400_v41 = vmul.f32 %v880_v35, %v766_v31 }
 0x144   : > { %v882_v38 = vpop.eup %881  ;;  %408 = vadd.xlane.f32.xlu0 %v407_v36  ;;  %v404_v44 = vsel %vm251_vm0, %v396_v37, 0.0 }
 0x145   : > { %v884_v39 = vpop.eup %883  ;;  %v399_v40 = vmul.f32 %v882_v38, %v766_v31  ;;  %v416_v47 = vsel %vm251_vm0, %v400_v41, 0.0 }
 0x146   : > { %v886_v42 = vpop.eup %885  ;;  %v398_v45 = vmul.f32 %v884_v39, %v766_v31 }
 0x147   : > { %v413_v43 = vsel %vm251_vm0, %v399_v40, 0.0  ;;  %v888_v46 = vpop.eup %887  ;;  %v402_v48 = vmul.f32 %v886_v42, %v766_v31 }
 0x148   : > { %414 = vadd.xlane.f32.xlu1 %v413_v43  ;;  %405 = vadd.xlane.f32.xlu0 %v404_v44  ;;  %v410_v49 = vsel %vm251_vm0, %v398_v45, 0.0  ;;  %v401_v50 = vmul.f32 %v888_v46, %v766_v31  ;;  %v890_v51 = vpop.eup %889 }
 0x149   : > { %v422_v52 = vsel %vm251_vm0, %v402_v48, 0.0  ;;  %v403_v54 = vmul.f32 %v890_v51, %v766_v31 }
 0x14a   : > { %v419_v53 = vsel %vm251_vm0, %v401_v50, 0.0 }
 0x14b   : > { %v425_v55 = vsel %vm251_vm0, %v403_v54, 0.0 }
 0x14c   : > { %411 = vadd.xlane.f32.xlu1 %v410_v49  ;;  %417 = vadd.xlane.f32.xlu0 %v416_v47 }
 0x150   : > { %420 = vadd.xlane.f32.xlu1 %v419_v53  ;;  %423 = vadd.xlane.f32.xlu0 %v422_v52 }
 0x154   : > { %426 = vadd.xlane.f32.xlu1 %v425_v55 }
 0x1d1   : > { %v409_v56 = vpop.xlane.xlu0 %408 }
 0x1d2   : > { %v434_v57 = vrot.slane %v409_v56, 4 }
 0x1d4   : > { %v435_v58 = vmax.f32 %v409_v56, %v434_v57 }
 0x1d5   : > { %v415_v59 = vpop.xlane.xlu1 %414  ;;  %v406_v60 = vpop.xlane.xlu0 %405 }
 0x1d6   : > { %v436_v61 = vrot.slane %v435_v58, 2  ;;  %v446_v62 = vrot.slane %v415_v59, 4  ;;  %v428_v63 = vrot.slane %v406_v60, 4 }
 0x1d8   : > { %v437_v0 = vmax.f32 %v435_v58, %v436_v61  ;;  %v447_v1 = vmax.f32 %v415_v59, %v446_v62  ;;  %v429_v2 = vmax.f32 %v406_v60, %v428_v63 }
 0x1d9   : > { %v412_v3 = vpop.xlane.xlu1 %411  ;;  %v418_v4 = vpop.xlane.xlu0 %417 }
 0x1da   : > { %v438_v6 = vrot.slane %v437_v0, 1  ;;  %v448_v14 = vrot.slane %v447_v1, 2  ;;  %v430_v15 = vrot.slane %v429_v2, 2  ;;  %v440_v16 = vrot.slane %v412_v3, 4 }
 0x1db   : > { %v452_v17 = vrot.slane %v418_v4, 4 }
 0x1dc   : > { %v439_v18 = vmax.f32 %v437_v0, %v438_v6  ;;  %v449_v19 = vmax.f32 %v447_v1, %v448_v14  ;;  %v431_v20 = vmax.f32 %v429_v2, %v430_v15  ;;  %v441_v21 = vmax.f32 %v412_v3, %v440_v16 }
 0x1dd   : > { %v453_v22 = vmax.f32 %v418_v4, %v452_v17  ;;  %v421_v23 = vpop.xlane.xlu1 %420  ;;  %v424_v24 = vpop.xlane.xlu0 %423 }
 0x1de   : > { %v477_v25 = vsub.f32 %v409_v56, %v439_v18  ;;  %v450_v26 = vrot.slane %v449_v19, 1  ;;  %v432_v27 = vrot.slane %v431_v20, 1  ;;  %v442_v28 = vrot.slane %v441_v21, 2 }
 0x1df   : > { %v454_v29 = vrot.slane %v453_v22, 2  ;;  %v458_v30 = vrot.slane %v421_v23, 4  ;;  %v464_v31 = vrot.slane %v424_v24, 4 }
 0x1e0   : > { %v486_v32 = vmul.f32 1.442695, %v477_v25  ;;  %v451_v33 = vmax.f32 %v449_v19, %v450_v26  ;;  %v433_v34 = vmax.f32 %v431_v20, %v432_v27  ;;  %v443_v35 = vmax.f32 %v441_v21, %v442_v28 }
 0x1e1   : > { %v455_v36 = vmax.f32 %v453_v22, %v454_v29  ;;  %v459_v37 = vmax.f32 %v421_v23, %v458_v30  ;;  %v465_v38 = vmax.f32 %v424_v24, %v464_v31  ;;  %v427_v39 = vpop.xlane.xlu1 %426 }
 0x1e2   : > { %891 = vpow2.f32 %v486_v32  ;;  %v479_v40 = vsub.f32 %v415_v59, %v451_v33  ;;  %v476_v41 = vsub.f32 %v406_v60, %v433_v34  ;;  %v444_v42 = vrot.slane %v443_v35, 1 }
 0x1e3   : > { %v456_v43 = vrot.slane %v455_v36, 1  ;;  %v460_v44 = vrot.slane %v459_v37, 2  ;;  %v466_v45 = vrot.slane %v465_v38, 2  ;;  %v470_v46 = vrot.slane %v427_v39, 4 }
 0x1e4   : > { %v490_v47 = vmul.f32 1.442695, %v479_v40  ;;  %v484_v48 = vmul.f32 1.442695, %v476_v41  ;;  %v445_v49 = vmax.f32 %v443_v35, %v444_v42 }
 0x1e5   : > { %v457_v50 = vmax.f32 %v455_v36, %v456_v43  ;;  %v461_v51 = vmax.f32 %v459_v37, %v460_v44  ;;  %v467_v52 = vmax.f32 %v465_v38, %v466_v45  ;;  %v471_v53 = vmax.f32 %v427_v39, %v470_v46 }
 0x1e6   : > { %893 = vpow2.f32 %v490_v47  ;;  %v478_v54 = vsub.f32 %v412_v3, %v445_v49 }
 0x1e7   : > { %895 = vpow2.f32 %v484_v48  ;;  %v480_v55 = vsub.f32 %v418_v4, %v457_v50  ;;  %v462_v56 = vrot.slane %v461_v51, 1  ;;  %v468_v57 = vrot.slane %v467_v52, 1 }
 0x1e8   : > { %v488_v58 = vmul.f32 1.442695, %v478_v54  ;;  %v472_v59 = vrot.slane %v471_v53, 2 }
 0x1e9   : > { %v492_v60 = vmul.f32 1.442695, %v480_v55  ;;  %v463_v61 = vmax.f32 %v461_v51, %v462_v56  ;;  %v469_v62 = vmax.f32 %v467_v52, %v468_v57 }
 0x1ea   : > { %897 = vpow2.f32 %v488_v58  ;;  %v473_v63 = vmax.f32 %v471_v53, %v472_v59 }
 0x1eb   : > { %899 = vpow2.f32 %v492_v60  ;;  %v481_v0 = vsub.f32 %v421_v23, %v463_v61  ;;  %v482_v1 = vsub.f32 %v424_v24, %v469_v62 }
 0x1ec   : > { %v1296_v2 = vpop.eup %891  ;;  %v474_v6 = vrot.slane %v473_v63, 1 }
 0x1ed   : > { %v506_v14 = vrot.slane %v1296_v2, 4  ;;  %v494_v3 = vmul.f32 1.442695, %v481_v0  ;;  %v496_v15 = vmul.f32 1.442695, %v482_v1 }
 0x1ee   : > { %v475_v4 = vmax.f32 %v473_v63, %v474_v6 }
 0x1ef   : > { %v507_v16 = vadd.f32 %v1296_v2, %v506_v14  ;;  %901 = vpow2.f32 %v494_v3 }
 0x1f0   : > { %v1300_v17 = vpop.eup %893  ;;  %903 = vpow2.f32 %v496_v15  ;;  %v483_v18 = vsub.f32 %v427_v39, %v475_v4 }
 0x1f1   : > { %v1302_v19 = vpop.eup %895  ;;  %v508_v20 = vrot.slane %v507_v16, 2  ;;  %v518_v21 = vrot.slane %v1300_v17, 4 }
 0x1f2   : > { %v500_v22 = vrot.slane %v1302_v19, 4  ;;  %v498_v23 = vmul.f32 1.442695, %v483_v18 }
 0x1f3   : > { %v509_v24 = vadd.f32 %v508_v20, %v507_v16  ;;  %v519_v25 = vadd.f32 %v1300_v17, %v518_v21 }
 0x1f4   : > { %v1307_v26 = vpop.eup %897  ;;  %v501_v27 = vadd.f32 %v1302_v19, %v500_v22  ;;  %905 = vpow2.f32 %v498_v23 }
 0x1f5   : > { %v1310_v28 = vpop.eup %899  ;;  %v510_v29 = vrot.slane %v509_v24, 1  ;;  %v520_v30 = vrot.slane %v519_v25, 2  ;;  %v512_v31 = vrot.slane %v1307_v26, 4 }
 0x1f6   : > { %v502_v32 = vrot.slane %v501_v27, 2  ;;  %v524_v33 = vrot.slane %v1310_v28, 4 }
 0x1f7   : > { %v511_v34 = vadd.f32 %v510_v29, %v509_v24  ;;  %v521_v35 = vadd.f32 %v520_v30, %v519_v25  ;;  %v513_v36 = vadd.f32 %v1307_v26, %v512_v31 }
 0x1f8   : > { %v503_v37 = vadd.f32 %v502_v32, %v501_v27  ;;  %v525_v38 = vadd.f32 %v1310_v28, %v524_v33 }
 0x1f9   : > { %v1316_v39 = vpop.eup %901  ;;  %907 = vrcp.f32 %v511_v34  ;;  %v522_v40 = vrot.slane %v521_v35, 1  ;;  %v514_v41 = vrot.slane %v513_v36, 2 }
 0x1fa   : > { %v1318_v42 = vpop.eup %903  ;;  %v504_v43 = vrot.slane %v503_v37, 1  ;;  %v526_v44 = vrot.slane %v525_v38, 2  ;;  %v530_v45 = vrot.slane %v1316_v39, 4 }
 0x1fb   : > { %v523_v46 = vadd.f32 %v522_v40, %v521_v35  ;;  %v515_v47 = vadd.f32 %v514_v41, %v513_v36  ;;  %v536_v48 = vrot.slane %v1318_v42, 4 }
 0x1fc   : > { %v505_v49 = vadd.f32 %v504_v43, %v503_v37  ;;  %v527_v50 = vadd.f32 %v526_v44, %v525_v38  ;;  %v531_v51 = vadd.f32 %v1316_v39, %v530_v45 }
 0x1fd   : > { %909 = vrcp.f32 %v523_v46  ;;  %v516_v52 = vrot.slane %v515_v47, 1  ;;  %v537_v53 = vadd.f32 %v1318_v42, %v536_v48 }
 0x1fe   : > { %v1324_v54 = vpop.eup %905  ;;  %911 = vrcp.f32 %v505_v49  ;;  %v528_v55 = vrot.slane %v527_v50, 1  ;;  %v532_v56 = vrot.slane %v531_v51, 2 }
 0x1ff   : > { %v517_v57 = vadd.f32 %v516_v52, %v515_v47  ;;  %v538_v58 = vrot.slane %v537_v53, 2  ;;  %v542_v59 = vrot.slane %v1324_v54, 4 }
 0x200   : > { %v529_v60 = vadd.f32 %v528_v55, %v527_v50  ;;  %v533_v61 = vadd.f32 %v532_v56, %v531_v51 }
 0x201   : > { %913 = vrcp.f32 %v517_v57  ;;  %v539_v62 = vadd.f32 %v538_v58, %v537_v53  ;;  %v543_v63 = vadd.f32 %v1324_v54, %v542_v59 }
 0x202   : > { %915 = vrcp.f32 %v529_v60  ;;  %v534_v0 = vrot.slane %v533_v61, 1 }
 0x203   : > { %v908_v1 = vpop.eup %907  ;;  %v540_v6 = vrot.slane %v539_v62, 1  ;;  %v544_v14 = vrot.slane %v543_v63, 2 }
 0x204   : > { %v557_v3 = vmul.f32 %v908_v1, %v1296_v2  ;;  %v535_v15 = vadd.f32 %v534_v0, %v533_v61 }
 0x205   : > { %v541_v4 = vadd.f32 %v540_v6, %v539_v62  ;;  %v545_v16 = vadd.f32 %v544_v14, %v543_v63 }
 0x206   : > { %v565_v18 = vmul.f32 %v557_v3, %v1253_v8  ;;  %917 = vrcp.f32 %v535_v15 }
 0x207   : > { %v910_v20 = vpop.eup %909  ;;  %919 = vrcp.f32 %v541_v4  ;;  %v546_v21 = vrot.slane %v545_v16, 1 }
 0x208   : > { %v912_v22 = vpop.eup %911  ;;  %v559_v23 = vmul.f32 %v910_v20, %v1300_v17  ;;  %v579_v24 = vsel %vm251_vm0, %v565_v18, 0.0 }
 0x209   : > { %v556_v25 = vmul.f32 %v912_v22, %v1302_v19  ;;  %v547_v27 = vadd.f32 %v546_v21, %v545_v16  ;;  %v580_v29 = vrot.slane %v579_v24, 4 }
 0x20a   : > { %v567_v2 = vmul.f32 %v559_v23, %v1271_v12 }
 0x20b   : > { %v914_v30 = vpop.eup %913  ;;  %v564_v31 = vmul.f32 %v556_v25, %v1243_v5  ;;  %921 = vrcp.f32 %v547_v27  ;;  %v581_v8 = vadd.f32 %v580_v29, %v579_v24 }
 0x20c   : > { %v916_v32 = vpop.eup %915  ;;  %v558_v33 = vmul.f32 %v914_v30, %v1307_v26  ;;  %v593_v34 = vsel %vm251_vm0, %v567_v2, 0.0 }
 0x20d   : > { %v560_v17 = vmul.f32 %v916_v32, %v1310_v28  ;;  %v572_v35 = vsel %vm251_vm0, %v564_v31, 0.0  ;;  %v582_v36 = vrot.slane %v581_v8, 2  ;;  %v594_v19 = vrot.slane %v593_v34, 4 }
 0x20e   : > { %v566_v37 = vmul.f32 %v558_v33, %v1259_v10  ;;  %v573_v38 = vrot.slane %v572_v35, 4 }
 0x20f   : > { %v568_v12 = vmul.f32 %v560_v17, %v1248_v7  ;;  %v595_v40 = vadd.f32 %v594_v19, %v593_v34  ;;  %v583_v45 = vadd.f32 %v582_v36, %v581_v8 }
 0x210   : > { %v918_v5 = vpop.eup %917  ;;  %v574_v41 = vadd.f32 %v573_v38, %v572_v35  ;;  %v586_v43 = vsel %vm251_vm0, %v566_v37, 0.0 }
 0x211   : > { %v920_v44 = vpop.eup %919  ;;  %v561_v26 = vmul.f32 %v918_v5, %v1316_v39  ;;  %v587_v46 = vrot.slane %v586_v43, 4  ;;  %v596_v28 = vrot.slane %v595_v40, 2  ;;  %v600_v49 = vsel %vm251_vm0, %v568_v12, 0.0 }
 0x212   : > { %v562_v47 = vmul.f32 %v920_v44, %v1318_v42  ;;  %v575_v48 = vrot.slane %v574_v41, 2  ;;  %v601_v53 = vrot.slane %v600_v49, 4  ;;  %v584_v56 = vrot.slane %v583_v45, 1 }
 0x213   : > { %v569_v10 = vmul.f32 %v561_v26, %v1256_v9  ;;  %v588_v50 = vadd.f32 %v587_v46, %v586_v43  ;;  %v597_v7 = vadd.f32 %v596_v28, %v595_v40 }
 0x214   : > { %v570_v51 = vmul.f32 %v562_v47, %v1262_v11  ;;  %v576_v52 = vadd.f32 %v575_v48, %v574_v41  ;;  %v602_v42 = vadd.f32 %v601_v53, %v600_v49  ;;  %v585_v3 = vadd.f32 %v584_v56, %v583_v45 }
 0x215   : > { %v922_v55 = vpop.eup %921  ;;  %v589_v57 = vrot.slane %v588_v50, 2  ;;  %v607_v39 = vsel %vm251_vm0, %v569_v10, 0.0  ;;  %v598_v62 = vrot.slane %v597_v7, 1 }
 0x216   : > { %v563_v58 = vmul.f32 %v922_v55, %v1324_v54  ;;  %v577_v59 = vrot.slane %v576_v52, 1  ;;  %v608_v60 = vrot.slane %v607_v39, 4  ;;  %v614_v9 = vsel %vm251_vm0, %v570_v51, 0.0 }
 0x217   : > { %v590_v61 = vadd.f32 %v589_v57, %v588_v50  ;;  %v603_v11 = vrot.slane %v602_v42, 2  ;;  %v615_v14 = vrot.slane %v614_v9, 4  ;;  %v599_v21 = vadd.f32 %v598_v62, %v597_v7 }
 0x218   : > { %v571_v63 = vmul.f32 %v563_v58, %v1276_v13  ;;  %v578_v0 = vadd.f32 %v577_v59, %v576_v52  ;;  %v609_v1 = vadd.f32 %v608_v60, %v607_v39 }
 0x219   : > { %v591_v6 = vrot.slane %v590_v61, 1  ;;  %v604_v15 = vadd.f32 %v603_v11, %v602_v42  ;;  %v616_v18 = vadd.f32 %v615_v14, %v614_v9 }
 0x21a   : > { %v610_v54 = vrot.slane %v609_v1, 2  ;;  %v621_v4 = vsel %vm251_vm0, %v571_v63, 0.0  ;;  %v637_v23 = vsel %vm636_vm1, %v585_v3, %v578_v0 }
 0x21b   : > { %v592_v16 = vadd.f32 %v591_v6, %v590_v61  ;;  %v622_v20 = vrot.slane %v621_v4, 4  ;;  %v605_v22 = vrot.slane %v604_v15, 1  ;;  %v617_v24 = vrot.slane %v616_v18, 2 }
 0x21c   : > { %v611_v13 = vadd.f32 %v610_v54, %v609_v1 }
 0x21d   : > { %v623_v25 = vadd.f32 %v622_v20, %v621_v4  ;;  %v639_v27 = vsel %vm638_vm2, %v592_v16, %v637_v23  ;;  %v606_v29 = vadd.f32 %v605_v22, %v604_v15  ;;  %v618_v31 = vadd.f32 %v617_v24, %v616_v18 }
 0x21e   : > { %v612_v2 = vrot.slane %v611_v13, 1  ;;  %v641_v30 = vsel %vm640_vm3, %v599_v21, %v639_v27 }
 0x21f   : > { %v624_v8 = vrot.slane %v623_v25, 2  ;;  %v643_v33 = vsel %vm642_vm4, %v606_v29, %v641_v30  ;;  %v619_v34 = vrot.slane %v618_v31, 1 }
 0x220   : > { %v613_v32 = vadd.f32 %v612_v2, %v611_v13 }
 0x221   : > { %v625_v17 = vadd.f32 %v624_v8, %v623_v25  ;;  %v620_v35 = vadd.f32 %v619_v34, %v618_v31 }
 0x222   : > { %v645_v19 = vsel %vm644_vm5, %v613_v32, %v643_v33 }
 0x223   : > { %v626_v36 = vrot.slane %v625_v17, 1  ;;  %v647_v38 = vsel %vm646_vm6, %v620_v35, %v645_v19 }
 0x225   : > { %v627_v37 = vadd.f32 %v626_v36, %v625_v17 }
 0x227   : > { %v649_v12 = vsel %vm648_vm7, %v627_v37, %v647_v38 }
 0x228   : > { %651 = vst.msk [vmem:[%s230_s29] sm:$0xff] %vm251_vm0, %v649_v12 }
 0x229   : > { %994 = shalt.err (!%p991_p7)
}
 0x22a   : > { %s995_s11 = scalar_lea.hbm %s1358_s8, 128  ;;  %s999_s23 = scalar_lea.hbm %s1407_s4, 256 }
 0x22b   : > { %p996_p9 = scmp.ne.s32.totalorder %s1358_s8, %s995_s11  ;;  %p1000_p5 = scmp.lt.u32.totalorder %s1358_s8, %s1407_s4 }
 0x22c   : > { %p1001_p11 = scmp.lt.u32.totalorder %s999_s23, %s995_s11  ;;  %p1003_p4 = scmp.lt.u32.totalorder %s995_s11, %s1358_s8 }
 0x22d   : > { %p997_p1 = pnand %p996_p9, %p1177_p12 }
 0x22e   : > { %p1002_p2 = por %p1001_p11, %p1000_p5 }
 0x22f   : > { %p998_p0 = pneg %p997_p1 }
 0x230   : > { %p1004_p6 = por %p1003_p4, %p1002_p2 }
 0x232   : > { %p1005_p8 = pnand %p1004_p6, %p998_p0 }
 0x234   : > { %1008 = shalt.err (!%p1005_p8)
}
 0x235   : > { %822 = dma.vmem_to_hbm [thread:$0]  (%p1177_p12), %s1360_s10, 128, %s1358_s8, %s653_s25  }
 0x236 PF: > { %s678_s9 = sand.u32 1, %s1039_s15   ;;  %p1422_p10 = scmp.ne.s32.totalorder %s1412_s22, 0 }
 0x237   : > { %p1423_p13 = scmp.ge.s32.totalorder %s1051_s18, 2  ;;  %s679_s28 = scalar_lea.sflag [#allocation4], %s678_s9 }
 0x239   : > { %p833_p3 = pnand %p1423_p13, %p1422_p10 }
 0x23b   : > { %1034 = dma.done.wait (!%p833_p3), %s679_s28, 128  }
 0x23c   : > { %1036 = vsyncadd (!%p833_p3), %s679_s28, 4294967168  ;;  %p18_p7 = scmp.ge.s32.totalorder %s1139_s27, 4   ;;  %s1424_s15 = smov %s1043_s16 }
 0x23d   : > { %s1425_s16 = smov %s1047_s17  ;;  %s1426_s17 = smov %s1173_s24 }
 0x23e   : > { %s1427_s18 = smov %s1139_s27  ;;  %20 = sbr.rel (!%p18_p7) target bundleno = 6 (0x6), region = 85 }
 0x245   :  { %684 = vsyncpa [#allocation3], 1 }
 0x246   :  { %686 = vsyncpa [#allocation3 + $0x1], 1 }
 0x247   :  { %687 = vsyncpa [#allocation6], 1 }
 0x248   :  { %688 = vsyncpa [#allocation4], 1 }
 0x249   :  { %690 = vsyncpa [#allocation4 + $0x1], 1 }

</bundles_post_ra>
